<compile_context>
chip_gen: v5e
topology: v5e:2x2
jax: 0.10.0
libtpu: 0.0.40
codegen_flags: <defaults>
</compile_context>

<pallas_src>
import jax
import jax.numpy as jnp
from jax.experimental import pallas as pl
from jax.experimental.pallas import tpu as pltpu


def _round_up(n, m):
    return ((n + m - 1) // m) * m


def _make_kernel(n_block):
    """Fused decoder: n_block dense-conv matmuls + ReLU, then Linear + Sigmoid."""

    def kernel(x_ref, a_ref, lin_wt_ref, lin_b_ref, o_ref):
        # x_ref:      (P, TB)          bf16, batch on lanes
        # a_ref:      (n_block, P, P)  bf16, fused ConvTranspose matrices
        # lin_wt_ref: (out_dim, P)     bf16 (torch Linear.weight, zero-padded)
        # lin_b_ref:  (out_dim, 1)     f32
        # o_ref:      (out_dim, TB)    f32
        h = x_ref[...]                                            # (P, TB) bf16
        for i in range(n_block):                                  # short, unrolled
            acc = jnp.dot(a_ref[i], h,
                          preferred_element_type=jnp.float32)     # MXU, f32 acc
            h = jnp.maximum(acc, 0.0).astype(jnp.bfloat16)        # fused ReLU
        logits = jnp.dot(lin_wt_ref[...], h,
                         preferred_element_type=jnp.float32)      # (out_dim, TB)
        logits = logits + lin_b_ref[...]
        o_ref[...] = jax.nn.sigmoid(logits).astype(o_ref.dtype)   # EUP exp path

    return kernel


def vae_decoder_cnn_forward(x, conv_weights, lin_w, lin_b, *,
                            latent_dim, in_chan, stride=2, batch_tile=1024):
    """Pallas forward for VAEDecoderCNN.

    x:            (B, latent_dim)                  flattened latent
    conv_weights: list of (Cin_i, Cout_i, K)       torch ConvTranspose1d layout
    lin_w:        (hidden_align_dim, output_dim)   == torch Linear.weight.T
    lin_b:        (output_dim,)
    returns:      (B, 1, output_dim)               same shape as the torch module
    """
    n_block = len(conv_weights)
    B = x.shape[0]
    c0 = latent_dim // in_chan
    l0 = in_chan
    assert x.shape[1] == latent_dim
    assert conv_weights[-1].shape[1] == 1, "last ConvTranspose1d must have Cout==1"

    # ---- Host side: collapse each ConvTranspose1d(stride, bias=False) into a
    # dense matrix  A_i[(co*Lout+lo), (ci*Lin+li)] = sum_k W[ci,co,k]*[lo==li*s+k].
    mats, dims = [], []
    lin_len, cin = l0, c0
    for w in conv_weights:
        cin_w, cout, ksz = w.shape
        assert cin_w == cin, (cin_w, cin)
        lout = (lin_len - 1) * stride + ksz
        pos = jnp.arange(lin_len) * stride
        S = jnp.stack([jax.nn.one_hot(pos + k, lout, dtype=jnp.float32)
                       for k in range(ksz)], axis=0)              # (K, Lin, Lout)
        A4 = jnp.einsum('iok,klm->omil', w.astype(jnp.float32), S)  # (Co,Lo,Ci,Li)
        mats.append(A4.reshape(cout * lout, cin * lin_len))
        dims.append((cout * lout, cin * lin_len))
        lin_len, cin = lout, cout

    hidden = lin_len                      # == hidden_align_dim
    assert lin_w.shape[0] == hidden, (lin_w.shape, hidden)
    out_dim = lin_w.shape[1]

    # Common padded feature width P (multiple of 8): every layer becomes one
    # (P, P) @ (P, TB) matmul and all matrices pack into one VMEM slab.
    P = _round_up(max([c0 * l0] + [r for r, _ in dims]), 8)
    a_stack = jnp.zeros((n_block, P, P), jnp.float32)
    for i, (A, (r, c)) in enumerate(zip(mats, dims)):
        a_stack = a_stack.at[i, :r, :c].set(A)
    a_stack = a_stack.astype(jnp.bfloat16)

    lin_wt = jnp.zeros((out_dim, P), jnp.float32)
    lin_wt = lin_wt.at[:, :hidden].set(lin_w.T.astype(jnp.float32))
    lin_wt = lin_wt.astype(jnp.bfloat16)
    lin_b2 = lin_b.reshape(out_dim, 1).astype(jnp.float32)

    # ---- Batch on lanes, padded to a multiple of the batch tile.
    TB = max(128, min(batch_tile, _round_up(B, 128)))
    B_pad = _round_up(B, TB)
    xt = x.reshape(B, latent_dim).T.astype(jnp.bfloat16)          # (latent, B)
    xt = jnp.pad(xt, ((0, P - latent_dim), (0, B_pad - B)))       # (P, B_pad)

    inv3 = lambda b: (0, 0, 0)
    inv2 = lambda b: (0, 0)

    out = pl.pallas_call(
        _make_kernel(n_block),
        grid=(B_pad // TB,),
        in_specs=[
            pl.BlockSpec((P, TB), lambda b: (0, b)),              # latent tile
            pl.BlockSpec((n_block, P, P), inv3),                  # fused conv mats
            pl.BlockSpec((out_dim, P), inv2),                     # linear weight^T
            pl.BlockSpec((out_dim, 1), inv2),                     # linear bias
        ],
        out_specs=pl.BlockSpec((out_dim, TB), lambda b: (0, b)),
        out_shape=jax.ShapeDtypeStruct((out_dim, B_pad), jnp.float32),
        compiler_params=pltpu.CompilerParams(
            dimension_semantics=("parallel",)),
    )(xt, a_stack, lin_wt, lin_b2)

    return out[:, :B].T.reshape(B, 1, out_dim)


if __name__ == "__main__":
    # Small config consistent with the module's constructor:
    #   n_block=3, latent_dim=32, in_chan=2 -> channels 16 -> 8 -> 4 -> 1,
    #   lengths 2 -> 5 -> 11 -> 23, so hidden_align_dim=23; output_dim=16.
    n_block = 3
    latent_dim = 32
    in_chan = 2
    kernel_sz = 3
    output_dim = 16
    batch = 2

    key = jax.random.PRNGKey(0)
    keys = jax.random.split(key, n_block + 3)

    # ConvTranspose1d weights exactly as torch lays them out:
    # (in_channels, out_channels, kernel_size), bias=False.
    conv_ws = []
    in_c = out_c = latent_dim // in_chan
    for i in range(n_block):
        out_c //= 2
        o_c = 1 if i == n_block - 1 else out_c
        conv_ws.append(0.3 * jax.random.normal(
            keys[i], (in_c, o_c, kernel_sz), jnp.float32))
        in_c = out_c

    # Decoder output length == hidden_align_dim of the Linear.
    hidden = in_chan
    for _ in range(n_block):
        hidden = (hidden - 1) * 2 + kernel_sz

    lin_w = 0.3 * jax.random.normal(keys[n_block], (hidden, output_dim), jnp.float32)
    lin_b = 0.1 * jax.random.normal(keys[n_block + 1], (output_dim,), jnp.float32)
    x = jax.random.normal(keys[n_block + 2], (batch, latent_dim), jnp.float32)

    out = vae_decoder_cnn_forward(
        x, conv_ws, lin_w, lin_b, latent_dim=latent_dim, in_chan=in_chan)
    out = jax.block_until_ready(out)

    # Pure-JAX f32 reference (same math as the PyTorch module).
    def ref_conv_transpose1d(h, w, stride=2):
        bb, cin, lin_ = h.shape
        _, cout, k = w.shape
        lout = (lin_ - 1) * stride + k
        y = jnp.zeros((bb, cout, lout), jnp.float32)
        for m in range(lin_):
            contrib = jnp.einsum("bc,cok->bok", h[:, :, m], w)
            y = y.at[:, :, m * stride:m * stride + k].add(contrib)
        return y

    h = x.reshape(batch, latent_dim // in_chan, in_chan)
    for w in conv_ws:
        h = jax.nn.relu(ref_conv_transpose1d(h, w))
    ref = jax.nn.sigmoid(jnp.einsum("bcl,lo->bco", h, lin_w) + lin_b)

    assert out.shape == (batch, 1, output_dim), out.shape
    # bf16 MXU operands (f32 accumulation) -> loosened tolerance vs f32 reference.
    max_err = float(jnp.max(jnp.abs(out - ref)))
    assert max_err < 2e-2, max_err

    print("KERNEL_OK")
</pallas_src>

<mosaic_0001>
module attributes {stable_mosaic.version = 11 : i64} {
  func.func @kernel(%arg0: i32, %arg1: memref<48x128xbf16, #tpu.memory_space<vmem>>, %arg2: memref<3x48x48xbf16, #tpu.memory_space<vmem>>, %arg3: memref<16x48xbf16, #tpu.memory_space<vmem>>, %arg4: memref<16x1xf32, #tpu.memory_space<vmem>>, %arg5: memref<16x128xf32, #tpu.memory_space<vmem>>) attributes {dimension_semantics = [#tpu.dimension_semantics<parallel>], iteration_bounds = array<i64: 1>, scalar_prefetch = 0 : i64, scratch_operands = 0 : i64, tpu.core_type = #tpu.core_type<tc>, window_params = [{transform_indices = @transform_0, window_bounds = array<i64: 48, 128>}, {pipeline_mode = #tpu.pipeline_mode<synchronous>, transform_indices = @transform_1, window_bounds = array<i64: 3, 48, 48>}, {pipeline_mode = #tpu.pipeline_mode<synchronous>, transform_indices = @transform_2, window_bounds = array<i64: 16, 48>}, {pipeline_mode = #tpu.pipeline_mode<synchronous>, transform_indices = @transform_3, window_bounds = array<i64: 16, 1>}, {transform_indices = @transform_4, window_bounds = array<i64: 16, 128>}]} {
    %c0 = arith.constant 0 : index
    %c0_0 = arith.constant 0 : index
    %0 = vector.load %arg1[%c0, %c0_0] : memref<48x128xbf16, #tpu.memory_space<vmem>>, vector<48x128xbf16>
    %c0_1 = arith.constant 0 : index
    %c0_2 = arith.constant 0 : index
    %c0_3 = arith.constant 0 : index
    %1 = vector.load %arg2[%c0_1, %c0_2, %c0_3] : memref<3x48x48xbf16, #tpu.memory_space<vmem>>, vector<1x48x48xbf16>
    %2 = vector.shape_cast %1 : vector<1x48x48xbf16> to vector<48x48xbf16>
    %cst = arith.constant dense<0.000000e+00> : vector<48x128xf32>
    %3 = tpu.matmul %2, %0, %cst {dimension_numbers = #tpu.dot_dimension_numbers<[1], [0], [0], [1], [0, 0, 1, 1], [], []>} : vector<48x48xbf16>, vector<48x128xbf16>, vector<48x128xf32> -> vector<48x128xf32>
    %cst_4 = arith.constant 0.000000e+00 : f32
    %4 = vector.broadcast %cst_4 : f32 to vector<48x128xf32>
    %5 = arith.maximumf %3, %4 : vector<48x128xf32>
    %6 = arith.truncf %5 : vector<48x128xf32> to vector<48x128xbf16>
    %c1 = arith.constant 1 : index
    %c0_5 = arith.constant 0 : index
    %c0_6 = arith.constant 0 : index
    %7 = vector.load %arg2[%c1, %c0_5, %c0_6] : memref<3x48x48xbf16, #tpu.memory_space<vmem>>, vector<1x48x48xbf16>
    %8 = vector.shape_cast %7 : vector<1x48x48xbf16> to vector<48x48xbf16>
    %cst_7 = arith.constant dense<0.000000e+00> : vector<48x128xf32>
    %9 = tpu.matmul %8, %6, %cst_7 {dimension_numbers = #tpu.dot_dimension_numbers<[1], [0], [0], [1], [0, 0, 1, 1], [], []>} : vector<48x48xbf16>, vector<48x128xbf16>, vector<48x128xf32> -> vector<48x128xf32>
    %cst_8 = arith.constant 0.000000e+00 : f32
    %10 = vector.broadcast %cst_8 : f32 to vector<48x128xf32>
    %11 = arith.maximumf %9, %10 : vector<48x128xf32>
    %12 = arith.truncf %11 : vector<48x128xf32> to vector<48x128xbf16>
    %c2 = arith.constant 2 : index
    %c0_9 = arith.constant 0 : index
    %c0_10 = arith.constant 0 : index
    %13 = vector.load %arg2[%c2, %c0_9, %c0_10] : memref<3x48x48xbf16, #tpu.memory_space<vmem>>, vector<1x48x48xbf16>
    %14 = vector.shape_cast %13 : vector<1x48x48xbf16> to vector<48x48xbf16>
    %cst_11 = arith.constant dense<0.000000e+00> : vector<48x128xf32>
    %15 = tpu.matmul %14, %12, %cst_11 {dimension_numbers = #tpu.dot_dimension_numbers<[1], [0], [0], [1], [0, 0, 1, 1], [], []>} : vector<48x48xbf16>, vector<48x128xbf16>, vector<48x128xf32> -> vector<48x128xf32>
    %cst_12 = arith.constant 0.000000e+00 : f32
    %16 = vector.broadcast %cst_12 : f32 to vector<48x128xf32>
    %17 = arith.maximumf %15, %16 : vector<48x128xf32>
    %18 = arith.truncf %17 : vector<48x128xf32> to vector<48x128xbf16>
    %c0_13 = arith.constant 0 : index
    %c0_14 = arith.constant 0 : index
    %19 = vector.load %arg3[%c0_13, %c0_14] : memref<16x48xbf16, #tpu.memory_space<vmem>>, vector<16x48xbf16>
    %cst_15 = arith.constant dense<0.000000e+00> : vector<16x128xf32>
    %20 = tpu.matmul %19, %18, %cst_15 {dimension_numbers = #tpu.dot_dimension_numbers<[1], [0], [0], [1], [0, 0, 1, 1], [], []>} : vector<16x48xbf16>, vector<48x128xbf16>, vector<16x128xf32> -> vector<16x128xf32>
    %c0_16 = arith.constant 0 : index
    %c0_17 = arith.constant 0 : index
    %21 = vector.load %arg4[%c0_16, %c0_17] : memref<16x1xf32, #tpu.memory_space<vmem>>, vector<16x1xf32>
    %22 = vector.broadcast %21 : vector<16x1xf32> to vector<16x128xf32>
    %23 = arith.addf %20, %22 : vector<16x128xf32>
    %24 = arith.negf %23 : vector<16x128xf32>
    %25 = math.exp %24 : vector<16x128xf32>
    %cst_18 = arith.constant 1.000000e+00 : f32
    %26 = vector.broadcast %cst_18 : f32 to vector<16x128xf32>
    %27 = arith.addf %26, %25 : vector<16x128xf32>
    %28 = arith.divf %26, %27 : vector<16x128xf32>
    %c0_19 = arith.constant 0 : index
    %c0_20 = arith.constant 0 : index
    %29 = vector.load %arg5[%c0_19, %c0_20] : memref<16x128xf32, #tpu.memory_space<vmem>>, vector<16x128xf32>
    tpu.vector_store %arg5[%c0_19, %c0_20], %28 {strides = array<i32>} : memref<16x128xf32, #tpu.memory_space<vmem>>, vector<16x128xf32>,
    return
  }
  func.func @transform_0(%arg0: i32) -> (i32, i32) {
    %c0_i32 = arith.constant 0 : i32
    %c0_i32_0 = arith.constant 0 : i32
    return %c0_i32, %arg0 : i32, i32
  }
  func.func @transform_1(%arg0: i32) -> (i32, i32, i32) {
    %c0_i32 = arith.constant 0 : i32
    %c0_i32_0 = arith.constant 0 : i32
    %c0_i32_1 = arith.constant 0 : i32
    %c0_i32_2 = arith.constant 0 : i32
    return %c0_i32, %c0_i32_0, %c0_i32_1 : i32, i32, i32
  }
  func.func @transform_2(%arg0: i32) -> (i32, i32) {
    %c0_i32 = arith.constant 0 : i32
    %c0_i32_0 = arith.constant 0 : i32
    %c0_i32_1 = arith.constant 0 : i32
    return %c0_i32, %c0_i32_0 : i32, i32
  }
  func.func @transform_3(%arg0: i32) -> (i32, i32) {
    %c0_i32 = arith.constant 0 : i32
    %c0_i32_0 = arith.constant 0 : i32
    %c0_i32_1 = arith.constant 0 : i32
    return %c0_i32, %c0_i32_0 : i32, i32
  }
  func.func @transform_4(%arg0: i32) -> (i32, i32) {
    %c0_i32 = arith.constant 0 : i32
    %c0_i32_0 = arith.constant 0 : i32
    return %c0_i32, %arg0 : i32, i32
  }
}

</mosaic_0001>

<bundles_post_ra>
// kernel: tpu_custom_call.1
= control target key start
LH: loop header
LB: loop body
LE: loop exit
PB: predicated region body
PF: predicated region fallthrough
CT: control target
= control target key end

     0   :  { %9 = vsyncpa [#allocation3], 0  ;;  %s596_s0 = inlined_call_operand.hbm [shape: bf16[48,128], index: 0, kind: input, shape index: {}]   ;;  %s597_s1 = inlined_call_operand.hbm [shape: bf16[3,48,48], index: 1, kind: input, shape index: {}]   ;;  %s598_s2 = inlined_call_operand.vmem [shape: bf16[16,48], index: 2, kind: input, shape index: {}]   ;;  %s599_s3 = inlined_call_operand.vmem [shape: f32[16,1], index: 3, kind: input, shape index: {}]   ;;  %s600_s4 = inlined_call_operand.hbm [shape: f32[16,128], index: 4, kind: output, shape index: {}]  }
   0x1   :  { %10 = vsyncpa [#allocation6], 0 }
   0x2   :  { %11 = vsyncpa [#allocation4], 0  ;;  %s16_s17 = sshll.u32 %s596_s0, 4  ;;  %s535_s18 = smov [#allocation2]   ;;  %s17_s17 = int_to_ptr.hbm [resolvable:$true] %s16_s17 }
   0x3   :  { %s18_s19 = sshll.u32 %s535_s18, 4  ;;  %s29_s22 = sshll.u32 %s597_s1, 4  ;;  %s19_s19 = int_to_ptr.vmem [resolvable:$true] %s18_s19  ;;  %s30_s22 = int_to_ptr.hbm [resolvable:$true] %s29_s22 }
   0x4   :  { %s536_s23 = smov 64   ;;  %s537_s24 = smov 4  }
   0x5   :  { %24 = dma.hbm_to_vmem [thread:$0]  %s17_s17, 384, %s19_s19, [#allocation3], %s536_s23, %s536_s23, %s537_s24  }
   0x6   :  { %s538_s25 = smov [#allocation5]  }
   0x7   :  { %s31_s26 = sshll.u32 %s538_s25, 4  ;;  %s32_s26 = int_to_ptr.vmem [resolvable:$true] %s31_s26 }
   0x8   :  { %37 = dma.hbm_to_vmem [thread:$0]  %s30_s22, 1152, %s32_s26, [#allocation6], %s536_s23, %s536_s23, %s537_s24  }
   0x9   :  { %529 = dma.done.wait [#allocation3], 384  }
   0xa   :  { %530 = vsyncadd [#allocation3], 4294966912 }
   0xb   :  { %531 = dma.done.wait [#allocation6], 1152  }
   0xc   :  { %532 = vsyncadd [#allocation6], 4294966144  ;;  %v429_v0 = vld [vmem:[#allocation2 + $0x10] sm:$0xff]  ;;  %v428_v1 = vld [vmem:[#allocation2 + $0x8] sm:$0xff]  ;;  %vm96_vm0 = vcmask 392192   ;;  %v539_v47 = vmov 0  }
   0xd   :  { %111 = vmatpush.bf16.msra.mxu0 %v429_v0  ;;  %v427_v2 = vld [vmem:[#allocation2] sm:$0xff]  ;;  %v430_v3 = vld [vmem:[#allocation5] sm:$0xff]  ;;  %v432_v5 = vld [vmem:[#allocation5 + $0x10] sm:$0xff]  ;;  %448 = vset.pattern.permute.xlu0 %v539_v47  ;;  %s349_s7 = sshll.u32 %s600_s4, 4  ;;  %s541_s8 = smov 128   ;;  %s350_s7 = int_to_ptr.hbm [resolvable:$true] %s349_s7 }
   0xe   :  { %v431_v4 = vld [vmem:[#allocation5 + $0x8] sm:$0xff]  ;;  %v433_v21 = vld [vmem:[#allocation5 + $0x18] sm:$0xff]  ;;  %v434_v22 = vld [vmem:[#allocation5 + $0x20] sm:$0xff]  ;;  %s542_s9 = smov 8  }
   0xf   :  { %v435_v23 = vld [vmem:[#allocation5 + $0x28] sm:$0xff]  ;;  %v436_v39 = vld [vmem:[#allocation5 + $0x30] sm:$0xff]  ;;  %v437_v40 = vld [vmem:[#allocation5 + $0x38] sm:$0xff] }
  0x10   :  { %v438_v41 = vld [vmem:[#allocation5 + $0x40] sm:$0xff]  ;;  %v269_v46 = vld [vmem:[%s599_s3] sm:$0xff]  ;;  %v270_v48 = vld [vmem:[%s599_s3 + $0x8] sm:$0xff] }
  0x11   :  { %112 = vmatpush.bf16.msra.mxu0 %v428_v1  ;;  %273 = vperm.xlu0 %448, %v269_v46   ;;  %v439_v60 = vld [vmem:[%s598_s2] sm:$0xff]  ;;  %s540_s2 = smov [#allocation7]  }
  0x12   :  { %s347_s3 = sshll.u32 %s540_s2, 4  ;;  %s348_s3 = int_to_ptr.vmem [resolvable:$true] %s347_s3 }
  0x15   :  { %113 = vmatpush.bf16.msra.mxu0 %v427_v2 }
  0x18   :  { %387 = vmatmul.msk.bf16.vlgmr.msra.gmra.mxu0 %vm96_vm0, %v430_v3 }
  0x19   :  { %278 = vperm.xlu0 %448, %v270_v48  }
  0x28   :  { %388 = vmatmul.msk.bf16.gmra.mxu0 %vm96_vm0, %v431_v4 }
  0x38   :  { %389 = vmatmul.msk.bf16.gmra.mxu0 %vm96_vm0, %v432_v5 }
  0x83   :  { %v274_v61 = vpop.permute.xlu0 %273 }
  0x8b   :  { %v279_v1 = vpop.permute.xlu0 %278 }
  0x95   :  { %v115_v6 = vpop.f32.mrf.mxu0 }
  0x96   :  { %v130_v19 = vmax.f32 %v115_v6, 0.0 }
  0x9d   :  { %v117_v7 = vpop.f32.mrf.mxu0 }
  0x9e   :  { %v131_v17 = vmax.f32 %v117_v7, 0.0 }
  0xa0   :  { %v136_v20 = vpack.c.bf16 %v131_v17, %v130_v19 }
  0xa5   :  { %v120_v8 = vpop.f32.mrf.mxu0 }
  0xa6   :  { %v132_v16 = vmax.f32 %v120_v8, 0.0 }
  0xad   :  { %v122_v9 = vpop.f32.mrf.mxu0 }
  0xae   :  { %v133_v14 = vmax.f32 %v122_v9, 0.0 }
  0xb0   :  { %v137_v18 = vpack.c.bf16 %v133_v14, %v132_v16 }
  0xb5   :  { %v125_v10 = vpop.f32.mrf.mxu0 }
  0xb6   :  { %v134_v12 = vmax.f32 %v125_v10, 0.0 }
  0xbd   :  { %v127_v11 = vpop.f32.mrf.mxu0 }
  0xbe   :  { %v135_v13 = vmax.f32 %v127_v11, 0.0 }
  0xc0   :  { %v138_v15 = vpack.c.bf16 %v135_v13, %v134_v12 }
  0xc2   :  { %175 = vmatpush.bf16.msra.mxu1 %v138_v15 }
  0xc6   :  { %176 = vmatpush.bf16.msra.mxu1 %v137_v18 }
  0xca   :  { %177 = vmatpush.bf16.msra.mxu1 %v136_v20 }
  0xcd   :  { %402 = vmatmul.msk.bf16.vlgmr.msra.gmra.mxu1 %vm96_vm0, %v433_v21 }
  0xdd   :  { %403 = vmatmul.msk.bf16.gmra.mxu1 %vm96_vm0, %v434_v22 }
  0xed   :  { %404 = vmatmul.msk.bf16.gmra.mxu1 %vm96_vm0, %v435_v23 }
 0x14a   :  { %v179_v24 = vpop.f32.mrf.mxu1 }
 0x14b   :  { %v194_v37 = vmax.f32 %v179_v24, 0.0 }
 0x152   :  { %v181_v25 = vpop.f32.mrf.mxu1 }
 0x153   :  { %v195_v35 = vmax.f32 %v181_v25, 0.0 }
 0x155   :  { %v200_v38 = vpack.c.bf16 %v195_v35, %v194_v37 }
 0x15a   :  { %v184_v26 = vpop.f32.mrf.mxu1 }
 0x15b   :  { %v196_v34 = vmax.f32 %v184_v26, 0.0 }
 0x162   :  { %v186_v27 = vpop.f32.mrf.mxu1 }
 0x163   :  { %v197_v32 = vmax.f32 %v186_v27, 0.0 }
 0x165   :  { %v201_v36 = vpack.c.bf16 %v197_v32, %v196_v34 }
 0x16a   :  { %v189_v28 = vpop.f32.mrf.mxu1 }
 0x16b   :  { %v198_v30 = vmax.f32 %v189_v28, 0.0 }
 0x172   :  { %v191_v29 = vpop.f32.mrf.mxu1 }
 0x173   :  { %v199_v31 = vmax.f32 %v191_v29, 0.0 }
 0x175   :  { %v202_v33 = vpack.c.bf16 %v199_v31, %v198_v30 }
 0x177   :  { %239 = vmatpush.bf16.msra.mxu2 %v202_v33 }
 0x17b   :  { %240 = vmatpush.bf16.msra.mxu2 %v201_v36 }
 0x17f   :  { %241 = vmatpush.bf16.msra.mxu2 %v200_v38 }
 0x182   :  { %417 = vmatmul.msk.bf16.vlgmr.msra.gmra.mxu2 %vm96_vm0, %v436_v39 }
 0x192   :  { %418 = vmatmul.msk.bf16.gmra.mxu2 %vm96_vm0, %v437_v40 }
 0x1a2   :  { %419 = vmatmul.msk.bf16.gmra.mxu2 %vm96_vm0, %v438_v41 }
 0x205   :  { %v243_v42 = vpop.f32.mrf.mxu2 }
 0x206   :  { %v258_v58 = vmax.f32 %v243_v42, 0.0 }
 0x20d   :  { %v245_v43 = vpop.f32.mrf.mxu2 }
 0x20e   :  { %v259_v56 = vmax.f32 %v245_v43, 0.0 }
 0x210   :  { %v264_v59 = vpack.c.bf16 %v259_v56, %v258_v58 }
 0x215   :  { %v248_v44 = vpop.f32.mrf.mxu2 }
 0x216   :  { %v260_v55 = vmax.f32 %v248_v44, 0.0 }
 0x21d   :  { %v250_v45 = vpop.f32.mrf.mxu2 }
 0x21e   :  { %v261_v53 = vmax.f32 %v250_v45, 0.0 }
 0x220   :  { %v265_v57 = vpack.c.bf16 %v261_v53, %v260_v55 }
 0x225   :  { %v253_v49 = vpop.f32.mrf.mxu2 }
 0x226   :  { %v262_v51 = vmax.f32 %v253_v49, 0.0 }
 0x22d   :  { %v255_v50 = vpop.f32.mrf.mxu2 }
 0x22e   :  { %v263_v52 = vmax.f32 %v255_v50, 0.0 }
 0x230   :  { %v266_v54 = vpack.c.bf16 %v263_v52, %v262_v51 }
 0x232   :  { %294 = vmatpush.bf16.msra.mxu3 %v266_v54 }
 0x236   :  { %295 = vmatpush.bf16.msra.mxu3 %v265_v57 }
 0x23a   :  { %296 = vmatpush.bf16.msra.mxu3 %v264_v59 }
 0x23d   :  { %424 = vmatmul.msk.bf16.vlgmr.msra.gmra.mxu3 %vm96_vm0, %v439_v60 }
 0x2c0   :  { %v298_v62 = vpop.f32.mrf.mxu3 }
 0x2c1   :  { %v299_v63 = vadd.f32 %v298_v62, %v274_v61 }
 0x2c3   :  { %v425_v0 = vmul.f32 -1.442695, %v299_v63 }
 0x2c5   :  { %449 = vpow2.f32 %v425_v0 }
 0x2c8   :  { %v300_v2 = vpop.f32.mrf.mxu3 }
 0x2c9   :  { %v301_v3 = vadd.f32 %v300_v2, %v279_v1 }
 0x2cb   :  { %v450_v4 = vpop.eup %449  ;;  %v426_v5 = vmul.f32 -1.442695, %v301_v3 }
 0x2cc   :  { %v309_v6 = vadd.f32 1.0, %v450_v4 }
 0x2cd   :  { %451 = vpow2.f32 %v426_v5 }
 0x2ce   :  { %453 = vrcp.f32 %v309_v6  ;;  %v322_v12 = vand.u32 2147483648, %v309_v6  ;;  %v320_v14 = vand.u32 2147483647, %v309_v6  ;;  %vm316_vm2 = vweird.f32 %v309_v6 }
 0x2d0   :  { %v323_v17 = vor.u32 1.1754944e-38, %v322_v12  ;;  %vm321_vm4 = vcmp.eq.f32.partialorder %v320_v14, 8.507059e+37 }
 0x2d3   :  { %v452_v7 = vpop.eup %451 }
 0x2d4   :  { %v454_v8 = vpop.eup %453  ;;  %v310_v9 = vadd.f32 1.0, %v452_v7 }
 0x2d5   :  { %v312_v10 = vmul.f32 %v454_v8, %v309_v6  ;;  %vm317_vm1 = vweird.f32 %v454_v8 }
 0x2d6   :  { %455 = vrcp.f32 %v310_v9  ;;  %vm318_vm3 = vmor %vm316_vm2, %vm317_vm1  ;;  %v337_v22 = vand.u32 2147483648, %v310_v9  ;;  %v335_v24 = vand.u32 2147483647, %v310_v9  ;;  %vm331_vm6 = vweird.f32 %v310_v9 }
 0x2d7   :  { %v313_v11 = vsub.f32 1.0, %v312_v10 }
 0x2d8   :  { %v338_v26 = vor.u32 1.1754944e-38, %v337_v22  ;;  %vm336_vm8 = vcmp.eq.f32.partialorder %v335_v24, 8.507059e+37 }
 0x2d9   :  { %v314_v13 = vmul.f32 %v454_v8, %v313_v11 }
 0x2db   :  { %v315_v15 = vadd.f32 %v454_v8, %v314_v13 }
 0x2dc   :  { %v456_v16 = vpop.eup %455 }
 0x2dd   :  { %v327_v18 = vmul.f32 %v456_v16, %v310_v9  ;;  %v319_v19 = vsel %vm318_vm3, %v454_v8, %v315_v15  ;;  %vm332_vm5 = vweird.f32 %v456_v16 }
 0x2de   :  { %v324_v20 = vsel %vm321_vm4, %v323_v17, %v319_v19  ;;  %vm333_vm7 = vmor %vm331_vm6, %vm332_vm5 }
 0x2df   :  { %v328_v21 = vsub.f32 1.0, %v327_v18  ;;  %341 = vst [vmem:[#allocation7] sm:$0xff] %v324_v20 }
 0x2e1   :  { %v329_v23 = vmul.f32 %v456_v16, %v328_v21 }
 0x2e3   :  { %v330_v25 = vadd.f32 %v456_v16, %v329_v23 }
 0x2e5   :  { %v334_v27 = vsel %vm333_vm7, %v456_v16, %v330_v25 }
 0x2e6   :  { %v339_v28 = vsel %vm336_vm8, %v338_v26, %v334_v27 }
 0x2e7   :  { %342 = vst [vmem:[#allocation7 + $0x8] sm:$0xff] %v339_v28 }
 0x2e8   :  { %355 = dma.vmem_to_hbm [thread:$0]  %s348_s3, 256, %s350_s7, [#allocation4], %s541_s8, %s541_s8, %s542_s9  }
 0x2e9   :  { %533 = dma.done.wait [#allocation4], 256  }
 0x2ea   :  { %534 = vsyncadd [#allocation4], 4294967040 }
 0x2eb   :  { %360 = vsyncpa [#allocation3], 1 }
 0x2ec   :  { %361 = vsyncpa [#allocation6], 1 }
 0x2ed   :  { %362 = vsyncpa [#allocation4], 1 }

</bundles_post_ra>
